<compile_context>
chip_gen: v6e
topology: v6e:2x2x1
jax: 0.10.0
libtpu: 0.0.40
codegen_flags: <defaults>
</compile_context>

<pallas_src>
import jax
import jax.numpy as jnp
from jax.experimental import pallas as pl
from jax.experimental.pallas import tpu as pltpu

IN_FEATURES = 784          # 28 * 28
HIDDEN1 = 128              # config['hidden_layer1']
HIDDEN2 = 64               # config['hidden_layer2']
NUM_CLASSES = 10
CLS_PAD = 128              # lane-dense output width
NEG_BIG = -1.0e30          # "minus infinity" bias for padded classes


def _round_up(n, m):
    return ((n + m - 1) // m) * m


def _dnn_kernel(x_ref, w1_ref, b1_ref, w2_ref, b2_ref, w3_ref, b3_ref, o_ref):
    """Fused 3-layer MLP + log_softmax on one batch tile.

    x_ref : (TB, 784) f32      w1: (784, 128) bf16   b1: (1, 128) f32
    w2    : (128, 64) bf16     b2: (1, 64)  f32
    w3    : (64, 128) bf16     b3: (1, 128) f32 (padded classes = -1e30)
    o_ref : (TB, 128) f32      (real log-probs in lanes 0..9)
    """
    # Cast x to bf16 in VMEM (no extra HBM pass); f32 MXU accumulation.
    xb = x_ref[...].astype(jnp.bfloat16)
    h1 = jnp.dot(xb, w1_ref[...], preferred_element_type=jnp.float32)
    h1 = jnp.maximum(h1 + b1_ref[...], 0.0)

    # Dropout2d (eval/inference mode) == identity.
    # TODO(synk): training-mode dropout (random masking / 1/(1-p) scaling) not implemented.

    # fc2 + ReLU
    h2 = jnp.dot(h1.astype(jnp.bfloat16), w2_ref[...],
                 preferred_element_type=jnp.float32)
    h2 = jnp.maximum(h2 + b2_ref[...], 0.0)

    # fc (output layer) — padded class columns have zero weights and -1e30 bias
    logits = jnp.dot(h2.astype(jnp.bfloat16), w3_ref[...],
                     preferred_element_type=jnp.float32) + b3_ref[...]

    # log_softmax along the class axis; padded classes underflow to exp(.)=0
    # and therefore leave the normalizer of the real 10 classes untouched.
    m = jnp.max(logits, axis=-1, keepdims=True)
    shifted = logits - m
    lse = jnp.log(jnp.sum(jnp.exp(shifted), axis=-1, keepdims=True))
    o_ref[...] = (shifted - lse).astype(o_ref.dtype)


def dnn_forward(x_nchw, params, *, batch_tile=1024):
    """Run the DNN forward pass.  x_nchw: [B, 1, 28, 28] float32."""
    w1, b1, w2, b2, w3, b3 = params
    B = x_nchw.shape[0]

    # x.view(-1, 28*28): contiguity-preserving reshape, no pad, no cast —
    # the kernel streams f32 rows and casts to bf16 in VMEM.
    x = x_nchw.reshape(B, IN_FEATURES).astype(jnp.float32)

    # Tiny weights: bf16 for the MXU operands (negligible wrapper cost),
    # biases stay f32.  Pad the class dim of fc3 out to 128 lanes.
    w1b = w1.astype(jnp.bfloat16)                                   # (784, 128)
    w2b = w2.astype(jnp.bfloat16)                                   # (128, 64)
    w3b = jnp.pad(w3, ((0, 0), (0, CLS_PAD - NUM_CLASSES))).astype(jnp.bfloat16)
    b1_2d = b1.reshape(1, HIDDEN1).astype(jnp.float32)
    b2_2d = b2.reshape(1, HIDDEN2).astype(jnp.float32)
    b3_2d = jnp.concatenate(
        [b3.astype(jnp.float32),
         jnp.full((CLS_PAD - NUM_CLASSES,), NEG_BIG, jnp.float32)]).reshape(1, CLS_PAD)

    # Tile selection: multiple of 16 (bf16 sublane packing), capped at 2048
    # so the f32 x block (+ double buffers + f32 intermediates) stays well
    # inside v7x's 64 MiB VMEM.  Small batches get a single tile rounded to
    # 16; no batch-pad copy of x is ever made (cdiv grid, OOB rows discarded).
    batch_tile = max(16, _round_up(min(int(batch_tile), 2048), 16))
    tile = min(batch_tile, _round_up(B, 16))
    grid = (pl.cdiv(B, tile),)

    # Weights are small and grid-invariant: constant index_map => no re-DMA.
    full = lambda i: (0, 0)

    # Advisory cost estimate: count the *useful* work + actual HBM traffic.
    flops = 2 * B * (IN_FEATURES * HIDDEN1 + HIDDEN1 * HIDDEN2
                     + HIDDEN2 * NUM_CLASSES)
    transcendentals = B * (NUM_CLASSES + 1)          # exp per real class + log per row
    bytes_accessed = (
        B * IN_FEATURES * 4                          # x stream (f32)
        + (IN_FEATURES * HIDDEN1 + HIDDEN1 * HIDDEN2 + HIDDEN2 * CLS_PAD) * 2
        + (HIDDEN1 + HIDDEN2 + CLS_PAD) * 4          # biases (f32)
        + B * CLS_PAD * 4)                           # output (f32)

    # Rough per-step VMEM need ~ tile * 10.5 KiB; raise the scoped limit for
    # big tiles (v5e default scoped limit is only 16 MiB) with headroom under
    # v7x's 64 MiB physical VMEM.
    vmem_limit = 48 * 1024 * 1024 if tile > 512 else None

    out = pl.pallas_call(
        _dnn_kernel,
        out_shape=jax.ShapeDtypeStruct((B, CLS_PAD), jnp.float32),
        grid_spec=pltpu.PrefetchScalarGridSpec(
            num_scalar_prefetch=0,
            grid=grid,
            in_specs=[
                pl.BlockSpec((tile, IN_FEATURES), lambda i: (i, 0)),
                pl.BlockSpec((IN_FEATURES, HIDDEN1), full),
                pl.BlockSpec((1, HIDDEN1), full),
                pl.BlockSpec((HIDDEN1, HIDDEN2), full),
                pl.BlockSpec((1, HIDDEN2), full),
                pl.BlockSpec((HIDDEN2, CLS_PAD), full),
                pl.BlockSpec((1, CLS_PAD), full),
            ],
            out_specs=pl.BlockSpec((tile, CLS_PAD), lambda i: (i, 0)),
        ),
        compiler_params=pltpu.CompilerParams(
            dimension_semantics=("parallel",),
            vmem_limit_bytes=vmem_limit,
        ),
        cost_estimate=pl.CostEstimate(
            flops=flops,
            transcendentals=transcendentals,
            bytes_accessed=bytes_accessed,
        ),
    )(x, w1b, b1_2d, w2b, b2_2d, w3b, b3_2d)

    # Drop the padded class lanes (batch dim is already exactly B:
    # the trailing partial block's OOB stores are discarded by Pallas).
    return out[:, :NUM_CLASSES]


def init_params(key):
    """Deterministic parameter init mimicking nn.Linear default (uniform ±1/sqrt(fan_in))."""
    ks = jax.random.split(key, 6)

    def linear(kw, kb, fan_in, fan_out):
        bound = 1.0 / jnp.sqrt(fan_in)
        w = jax.random.uniform(kw, (fan_in, fan_out), jnp.float32, -bound, bound)
        b = jax.random.uniform(kb, (fan_out,), jnp.float32, -bound, bound)
        return w, b

    w1, b1 = linear(ks[0], ks[1], IN_FEATURES, HIDDEN1)
    w2, b2 = linear(ks[2], ks[3], HIDDEN1, HIDDEN2)
    w3, b3 = linear(ks[4], ks[5], HIDDEN2, NUM_CLASSES)
    return (w1, b1, w2, b2, w3, b3)


def _reference(x_nchw, params):
    """Pure-JAX reference mirroring the kernel's bf16 operand quantization."""
    w1, b1, w2, b2, w3, b3 = params
    q = lambda a: a.astype(jnp.bfloat16).astype(jnp.float32)  # bf16 round-trip
    x = x_nchw.reshape(x_nchw.shape[0], IN_FEATURES)
    h1 = jnp.maximum(q(x) @ q(w1) + b1, 0.0)
    h2 = jnp.maximum(q(h1) @ q(w2) + b2, 0.0)
    logits = q(h2) @ q(w3) + b3
    return jax.nn.log_softmax(logits, axis=1)


if __name__ == "__main__":
    key = jax.random.PRNGKey(0)
    k_params, k_x = jax.random.split(key)

    params = init_params(k_params)

    # Small, non-multiple-of-16 batch to exercise the partial-block path.
    B = 13
    x = jax.random.normal(k_x, (B, 1, 28, 28), jnp.float32)  # NCHW like PyTorch

    out = dnn_forward(x, params)
    out = jax.block_until_ready(out)

    ref = _reference(x, params)
    assert out.shape == (B, NUM_CLASSES)
    assert bool(jnp.all(jnp.isfinite(out))), "non-finite outputs"
    assert jnp.allclose(out, ref, atol=1e-2, rtol=1e-2), "mismatch vs JAX reference"

    print("KERNEL_OK")
</pallas_src>

<mosaic_0001>
module attributes {stable_mosaic.version = 11 : i64} {
  func.func @_dnn_kernel(%arg0: i32, %arg1: memref<16x784xf32, #tpu.memory_space<vmem>>, %arg2: memref<784x128xbf16, #tpu.memory_space<vmem>>, %arg3: memref<1x128xf32, #tpu.memory_space<vmem>>, %arg4: memref<128x64xbf16, #tpu.memory_space<vmem>>, %arg5: memref<1x64xf32, #tpu.memory_space<vmem>>, %arg6: memref<64x128xbf16, #tpu.memory_space<vmem>>, %arg7: memref<1x128xf32, #tpu.memory_space<vmem>>, %arg8: memref<16x128xf32, #tpu.memory_space<vmem>>) attributes {dimension_semantics = [#tpu.dimension_semantics<parallel>], iteration_bounds = array<i64: 1>, scalar_prefetch = 0 : i64, scratch_operands = 0 : i64, tpu.core_type = #tpu.core_type<tc>, window_params = [{transform_indices = @transform_0, window_bounds = array<i64: 16, 784>}, {pipeline_mode = #tpu.pipeline_mode<synchronous>, transform_indices = @transform_1, window_bounds = array<i64: 784, 128>}, {pipeline_mode = #tpu.pipeline_mode<synchronous>, transform_indices = @transform_2, window_bounds = array<i64: 1, 128>}, {pipeline_mode = #tpu.pipeline_mode<synchronous>, transform_indices = @transform_3, window_bounds = array<i64: 128, 64>}, {pipeline_mode = #tpu.pipeline_mode<synchronous>, transform_indices = @transform_4, window_bounds = array<i64: 1, 64>}, {pipeline_mode = #tpu.pipeline_mode<synchronous>, transform_indices = @transform_5, window_bounds = array<i64: 64, 128>}, {pipeline_mode = #tpu.pipeline_mode<synchronous>, transform_indices = @transform_6, window_bounds = array<i64: 1, 128>}, {transform_indices = @transform_7, window_bounds = array<i64: 16, 128>}]} {
    %c0 = arith.constant 0 : index
    %c0_0 = arith.constant 0 : index
    %0 = vector.load %arg1[%c0, %c0_0] : memref<16x784xf32, #tpu.memory_space<vmem>>, vector<16x784xf32>
    %1 = arith.truncf %0 : vector<16x784xf32> to vector<16x784xbf16>
    %c0_1 = arith.constant 0 : index
    %c0_2 = arith.constant 0 : index
    %2 = vector.load %arg2[%c0_1, %c0_2] : memref<784x128xbf16, #tpu.memory_space<vmem>>, vector<784x128xbf16>
    %cst = arith.constant dense<0.000000e+00> : vector<16x128xf32>
    %3 = tpu.matmul %1, %2, %cst {dimension_numbers = #tpu.dot_dimension_numbers<[1], [0], [0], [1], [0, 0, 1, 1], [], []>} : vector<16x784xbf16>, vector<784x128xbf16>, vector<16x128xf32> -> vector<16x128xf32>
    %c0_3 = arith.constant 0 : index
    %c0_4 = arith.constant 0 : index
    %4 = vector.load %arg3[%c0_3, %c0_4] : memref<1x128xf32, #tpu.memory_space<vmem>>, vector<1x128xf32>
    %5 = vector.broadcast %4 : vector<1x128xf32> to vector<16x128xf32>
    %6 = arith.addf %3, %5 : vector<16x128xf32>
    %cst_5 = arith.constant 0.000000e+00 : f32
    %7 = vector.broadcast %cst_5 : f32 to vector<16x128xf32>
    %8 = arith.maximumf %6, %7 : vector<16x128xf32>
    %9 = arith.truncf %8 : vector<16x128xf32> to vector<16x128xbf16>
    %c0_6 = arith.constant 0 : index
    %c0_7 = arith.constant 0 : index
    %10 = vector.load %arg4[%c0_6, %c0_7] : memref<128x64xbf16, #tpu.memory_space<vmem>>, vector<128x64xbf16>
    %cst_8 = arith.constant dense<0.000000e+00> : vector<16x64xf32>
    %11 = tpu.matmul %9, %10, %cst_8 {dimension_numbers = #tpu.dot_dimension_numbers<[1], [0], [0], [1], [0, 0, 1, 1], [], []>} : vector<16x128xbf16>, vector<128x64xbf16>, vector<16x64xf32> -> vector<16x64xf32>
    %c0_9 = arith.constant 0 : index
    %c0_10 = arith.constant 0 : index
    %12 = vector.load %arg5[%c0_9, %c0_10] : memref<1x64xf32, #tpu.memory_space<vmem>>, vector<1x64xf32>
    %13 = vector.broadcast %12 : vector<1x64xf32> to vector<16x64xf32>
    %14 = arith.addf %11, %13 : vector<16x64xf32>
    %cst_11 = arith.constant 0.000000e+00 : f32
    %15 = vector.broadcast %cst_11 : f32 to vector<16x64xf32>
    %16 = arith.maximumf %14, %15 : vector<16x64xf32>
    %17 = arith.truncf %16 : vector<16x64xf32> to vector<16x64xbf16>
    %c0_12 = arith.constant 0 : index
    %c0_13 = arith.constant 0 : index
    %18 = vector.load %arg6[%c0_12, %c0_13] : memref<64x128xbf16, #tpu.memory_space<vmem>>, vector<64x128xbf16>
    %cst_14 = arith.constant dense<0.000000e+00> : vector<16x128xf32>
    %19 = tpu.matmul %17, %18, %cst_14 {dimension_numbers = #tpu.dot_dimension_numbers<[1], [0], [0], [1], [0, 0, 1, 1], [], []>} : vector<16x64xbf16>, vector<64x128xbf16>, vector<16x128xf32> -> vector<16x128xf32>
    %c0_15 = arith.constant 0 : index
    %c0_16 = arith.constant 0 : index
    %20 = vector.load %arg7[%c0_15, %c0_16] : memref<1x128xf32, #tpu.memory_space<vmem>>, vector<1x128xf32>
    %21 = vector.broadcast %20 : vector<1x128xf32> to vector<16x128xf32>
    %22 = arith.addf %19, %21 : vector<16x128xf32>
    %cst_17 = arith.constant dense<0xFF800000> : vector<16xf32>
    %23 = vector.multi_reduction <maximumf>, %22, %cst_17 [1] : vector<16x128xf32> to vector<16xf32>
    %24 = vector.shape_cast %23 : vector<16xf32> to vector<16x1xf32>
    %25 = vector.broadcast %24 : vector<16x1xf32> to vector<16x128xf32>
    %26 = arith.subf %22, %25 : vector<16x128xf32>
    %27 = math.exp %26 : vector<16x128xf32>
    %cst_18 = arith.constant dense<0.000000e+00> : vector<16xf32>
    %28 = vector.multi_reduction <add>, %27, %cst_18 [1] : vector<16x128xf32> to vector<16xf32>
    %29 = vector.shape_cast %28 : vector<16xf32> to vector<16x1xf32>
    %30 = math.log %29 : vector<16x1xf32>
    %31 = vector.broadcast %30 : vector<16x1xf32> to vector<16x128xf32>
    %32 = arith.subf %26, %31 : vector<16x128xf32>
    %c0_19 = arith.constant 0 : index
    %c0_20 = arith.constant 0 : index
    %33 = vector.load %arg8[%c0_19, %c0_20] : memref<16x128xf32, #tpu.memory_space<vmem>>, vector<16x128xf32>
    tpu.vector_store %arg8[%c0_19, %c0_20], %32 {strides = array<i32>} : memref<16x128xf32, #tpu.memory_space<vmem>>, vector<16x128xf32>,
    return
  }
  func.func @transform_0(%arg0: i32) -> (i32, i32) {
    %c0_i32 = arith.constant 0 : i32
    %c0_i32_0 = arith.constant 0 : i32
    return %arg0, %c0_i32 : i32, i32
  }
  func.func @transform_1(%arg0: i32) -> (i32, i32) {
    %c0_i32 = arith.constant 0 : i32
    %c0_i32_0 = arith.constant 0 : i32
    %c0_i32_1 = arith.constant 0 : i32
    return %c0_i32, %c0_i32_0 : i32, i32
  }
  func.func @transform_2(%arg0: i32) -> (i32, i32) {
    %c0_i32 = arith.constant 0 : i32
    %c0_i32_0 = arith.constant 0 : i32
    %c0_i32_1 = arith.constant 0 : i32
    return %c0_i32, %c0_i32_0 : i32, i32
  }
  func.func @transform_3(%arg0: i32) -> (i32, i32) {
    %c0_i32 = arith.constant 0 : i32
    %c0_i32_0 = arith.constant 0 : i32
    %c0_i32_1 = arith.constant 0 : i32
    return %c0_i32, %c0_i32_0 : i32, i32
  }
  func.func @transform_4(%arg0: i32) -> (i32, i32) {
    %c0_i32 = arith.constant 0 : i32
    %c0_i32_0 = arith.constant 0 : i32
    %c0_i32_1 = arith.constant 0 : i32
    return %c0_i32, %c0_i32_0 : i32, i32
  }
  func.func @transform_5(%arg0: i32) -> (i32, i32) {
    %c0_i32 = arith.constant 0 : i32
    %c0_i32_0 = arith.constant 0 : i32
    %c0_i32_1 = arith.constant 0 : i32
    return %c0_i32, %c0_i32_0 : i32, i32
  }
  func.func @transform_6(%arg0: i32) -> (i32, i32) {
    %c0_i32 = arith.constant 0 : i32
    %c0_i32_0 = arith.constant 0 : i32
    %c0_i32_1 = arith.constant 0 : i32
    return %c0_i32, %c0_i32_0 : i32, i32
  }
  func.func @transform_7(%arg0: i32) -> (i32, i32) {
    %c0_i32 = arith.constant 0 : i32
    %c0_i32_0 = arith.constant 0 : i32
    return %arg0, %c0_i32 : i32, i32
  }
}

</mosaic_0001>

<bundles_post_ra>
// kernel: tpu_custom_call.1
= control target key start
LH: loop header
LB: loop body
LE: loop exit
PB: predicated region body
PF: predicated region fallthrough
CT: control target
= control target key end

     0   :  { %12 = vsyncpa [#allocation3], 0  ;;  %s1342_s0 = inlined_call_operand.hbm [shape: f32[13,784], index: 0, kind: input, shape index: {}]   ;;  %s1343_s1 = inlined_call_operand.hbm [shape: bf16[784,128], index: 1, kind: input, shape index: {}]   ;;  %s1344_s2 = inlined_call_operand.vmem [shape: f32[1,128], index: 2, kind: input, shape index: {}]   ;;  %s1345_s3 = inlined_call_operand.vmem [shape: bf16[128,64], index: 3, kind: input, shape index: {}]   ;;  %s1346_s4 = inlined_call_operand.vmem [shape: f32[1,64], index: 4, kind: input, shape index: {}]   ;;  %s1347_s5 = inlined_call_operand.vmem [shape: bf16[64,128], index: 5, kind: input, shape index: {}]   ;;  %s1348_s6 = inlined_call_operand.vmem [shape: f32[1,128], index: 6, kind: input, shape index: {}]   ;;  %s1349_s7 = inlined_call_operand.hbm [shape: f32[13,128], index: 7, kind: output, shape index: {}]  }
   0x1   :  { %13 = vsyncpa [#allocation6], 0 }
   0x2   :  { %14 = vsyncpa [#allocation4], 0  ;;  %s1218_s24 = smov [#allocation2]  }
   0x3   :  { %s20_s25 = sshll.u32 %s1218_s24, 4  ;;  %s21_s25 = int_to_ptr.vmem [resolvable:$true] %s20_s25 }
   0x4   :  { %s1160_s26 = scalar_lea.vmem %s21_s25, 1792  ;;  %p1165_p1 = scmp.lt.s32.totalorder %s21_s25, %s21_s25 }
   0x5   :  { %p1161_p0 = scmp.ne.s32.totalorder %s21_s25, %s1160_s26  ;;  %p1166_p2 = scmp.lt.s32.totalorder %s1160_s26, %s1160_s26 }
   0x7   :  { %p1167_p3 = por %p1166_p2, %p1165_p1 }
   0x9   :  { %p1168_p4 = pnand %p1167_p3, %p1161_p0 }
   0xb   :  { %1171 = shalt.err (!%p1168_p4)
}
   0xc   :  { %s1219_s27 = smov 896   ;;  %s1220_s28 = smov 56  }
   0xd   :  { %26 = dma.hbm_to_vmem [thread:$0]  %s1342_s0, 1792, %s21_s25, [#allocation3], %s1219_s27, %s1219_s27, %s1220_s28  }
   0xe   :  { %s1221_s8 = smov [#allocation5]  }
   0xf   :  { %s32_s9 = sshll.u32 %s1221_s8, 4  ;;  %s33_s9 = int_to_ptr.vmem [resolvable:$true] %s32_s9 }
  0x10   :  { %s1180_s10 = scalar_lea.vmem %s33_s9, 6272  ;;  %p1185_p6 = scmp.lt.s32.totalorder %s33_s9, %s33_s9 }
  0x11   :  { %p1181_p5 = scmp.ne.s32.totalorder %s33_s9, %s1180_s10  ;;  %p1186_p7 = scmp.lt.s32.totalorder %s1180_s10, %s1180_s10 }
  0x13   :  { %p1187_p8 = por %p1186_p7, %p1185_p6 }
  0x15   :  { %p1188_p9 = pnand %p1187_p8, %p1181_p5 }
  0x17   :  { %1191 = shalt.err (!%p1188_p9)
}
  0x18   :  { %s1222_s11 = smov 64   ;;  %s1223_s12 = smov 4  }
  0x19   :  { %38 = dma.hbm_to_vmem [thread:$0]  %s1343_s1, 6272, %s33_s9, [#allocation6], %s1222_s11, %s1222_s11, %s1223_s12  }
  0x1a   :  { %1212 = dma.done.wait [#allocation3], 1792  }
  0x1b   :  { %1213 = vsyncadd [#allocation3], 4294965504 }
  0x1c   :  { %1214 = dma.done.wait [#allocation6], 6272  }
  0x1d   :  { %1215 = vsyncadd [#allocation6], 4294961024  ;;  %v1083_v0 = vld [vmem:[#allocation5 + $0x78] sm:$0xff]   ;;  %v1087_v4 = vld [vmem:[#allocation5 + $0x70] sm:$0xff]   ;;  %v1224_v43 = vmov 0.0   ;;  %vm1225_vm0 = vmmov 0  }
  0x1e   :  { %v1084_v1 = vld [vmem:[#allocation5 + $0x38] sm:$0xff]   ;;  %952 = vmatprep.subr.bf16.mxu0 %v1083_v0  ;;  %v1088_v5 = vld [vmem:[#allocation5 + $0x30] sm:$0xff]   ;;  %v1091_v8 = vld [vmem:[#allocation5 + $0x68] sm:$0xff]   ;;  %vm476_vm1 = vcmask 130048   ;;  %vm801_vm2 = vcmask 523264  }
  0x1f   :  { %v1085_v2 = vld [vmem:[#allocation5 + $0xf8] sm:$0xff]   ;;  %953 = vmatpush3.bf16.msra.mxu0 %v1084_v1  ;;  %v1089_v6 = vld [vmem:[#allocation5 + $0xf0] sm:$0xff]   ;;  %v1092_v9 = vld [vmem:[#allocation5 + $0x28] sm:$0xff]  }
  0x20   :  { %v1086_v3 = vld [vmem:[#allocation5 + $0xb8] sm:$0xff]   ;;  %974 = vmatprep.subr.bf16.mxu1 %v1085_v2  ;;  %954 = vmatprep.subr.bf16.mxu0 %v1087_v4  ;;  %v1090_v7 = vld [vmem:[#allocation5 + $0xb0] sm:$0xff]   ;;  %v1093_v10 = vld [vmem:[#allocation5 + $0xe8] sm:$0xff]  }
  0x21   :  { %975 = vmatpush3.bf16.msra.mxu1 %v1086_v3  ;;  %v1094_v11 = vld [vmem:[#allocation5 + $0xa8] sm:$0xff]   ;;  %v1095_v12 = vld [vmem:[#allocation5 + $0x60] sm:$0xff]   ;;  %v1099_v16 = vld [vmem:[#allocation5 + $0x58] sm:$0xff]  }
  0x22   :  { %976 = vmatprep.subr.bf16.mxu1 %v1089_v6  ;;  %v1096_v13 = vld [vmem:[#allocation5 + $0x20] sm:$0xff]   ;;  %v1100_v17 = vld [vmem:[#allocation5 + $0x18] sm:$0xff]   ;;  %v1103_v20 = vld [vmem:[#allocation5 + $0x50] sm:$0xff]  }
  0x23   :  { %955 = vmatpush3.bf16.msra.mxu0 %v1088_v5  ;;  %v1097_v14 = vld [vmem:[#allocation5 + $0xe0] sm:$0xff]   ;;  %v1101_v18 = vld [vmem:[#allocation5 + $0xd8] sm:$0xff]   ;;  %v1104_v21 = vld [vmem:[#allocation5 + $0x10] sm:$0xff]  }
  0x24   :  { %956 = vmatprep.subr.bf16.mxu0 %v1091_v8  ;;  %v1098_v15 = vld [vmem:[#allocation5 + $0xa0] sm:$0xff]   ;;  %v1102_v19 = vld [vmem:[#allocation5 + $0x98] sm:$0xff]   ;;  %v1105_v22 = vld [vmem:[#allocation5 + $0xd0] sm:$0xff]  }
  0x25   :  { %977 = vmatpush3.bf16.msra.mxu1 %v1090_v7  ;;  %v1106_v23 = vld [vmem:[#allocation5 + $0x90] sm:$0xff]   ;;  %v1107_v24 = vld [vmem:[#allocation5 + $0x48] sm:$0xff]   ;;  %v1111_v28 = vld [vmem:[#allocation5 + $0x40] sm:$0xff]  }
  0x26   :  { %978 = vmatprep.subr.bf16.mxu1 %v1093_v10  ;;  %v1108_v25 = vld [vmem:[#allocation5 + $0x8] sm:$0xff]   ;;  %v1112_v29 = vld [vmem:[#allocation5] sm:$0xff]   ;;  %v57_v31 = vld [vmem:[#allocation2 + $0x8] sm:$0xff] }
  0x27   :  { %957 = vmatpush3.bf16.msra.mxu0 %v1092_v9  ;;  %v1109_v26 = vld [vmem:[#allocation5 + $0xc8] sm:$0xff]   ;;  %v1113_v30 = vld [vmem:[#allocation5 + $0xc0] sm:$0xff]   ;;  %v64_v32 = vld [vmem:[#allocation2 + $0x40] sm:$0xff] }
  0x28   :  { %958 = vmatprep.subr.bf16.mxu0 %v1095_v12  ;;  %v1110_v27 = vld [vmem:[#allocation5 + $0x88] sm:$0xff]   ;;  %v71_v33 = vpack.c.bf16 %v64_v32, %v57_v31  ;;  %v1114_v34 = vld [vmem:[#allocation5 + $0x80] sm:$0xff]   ;;  %v56_v35 = vld [vmem:[#allocation2] sm:$0xff] }
  0x29   :  { %979 = vmatpush3.bf16.msra.mxu1 %v1094_v11  ;;  %v63_v36 = vld [vmem:[#allocation2 + $0x38] sm:$0xff]  ;;  %v1115_v38 = vld [vmem:[#allocation5 + $0x178] sm:$0xff]   ;;  %v66_v40 = vld [vmem:[#allocation2 + $0x50] sm:$0xff] }
  0x2a   :  { %980 = vmatprep.subr.bf16.mxu1 %v1097_v14  ;;  %512 = vmatprep.mubr.bf16.mxu0 %v71_v33  ;;  %v70_v37 = vpack.c.bf16 %v63_v36, %v56_v35  ;;  %v59_v39 = vld [vmem:[#allocation2 + $0x18] sm:$0xff]  ;;  %v1116_v42 = vld [vmem:[#allocation5 + $0x138] sm:$0xff]   ;;  %v58_v44 = vld [vmem:[#allocation2 + $0x10] sm:$0xff] }
  0x2b   :  { %959 = vmatpush3.bf16.msra.mxu0 %v1096_v13  ;;  %v73_v41 = vpack.c.bf16 %v66_v40, %v59_v39  ;;  %v65_v45 = vld [vmem:[#allocation2 + $0x48] sm:$0xff]  ;;  %v1117_v47 = vld [vmem:[#allocation5 + $0x170] sm:$0xff]   ;;  %v1119_v49 = vld [vmem:[#allocation5 + $0x168] sm:$0xff]  }
  0x2c   :  { %960 = vmatprep.subr.bf16.mxu0 %v1099_v16  ;;  %v72_v46 = vpack.c.bf16 %v65_v45, %v58_v44  ;;  %v1118_v48 = vld [vmem:[#allocation5 + $0x130] sm:$0xff]   ;;  %v1120_v50 = vld [vmem:[#allocation5 + $0x128] sm:$0xff]   ;;  %v1121_v51 = vld [vmem:[#allocation5 + $0x160] sm:$0xff]  }
  0x2d   :  { %981 = vmatpush3.bf16.msra.mxu1 %v1098_v15  ;;  %553 = vmatprep.mubr.bf16.mxu1 %v73_v41  ;;  %v1122_v52 = vld [vmem:[#allocation5 + $0x120] sm:$0xff]   ;;  %v1123_v53 = vld [vmem:[#allocation5 + $0x158] sm:$0xff]   ;;  %v1125_v55 = vld [vmem:[#allocation5 + $0x150] sm:$0xff]  }
  0x2e   :  { %982 = vmatprep.subr.bf16.mxu1 %v1101_v18  ;;  %v1124_v54 = vld [vmem:[#allocation5 + $0x118] sm:$0xff]   ;;  %v1131_v56 = vld [vmem:[#allocation5 + $0x180] sm:$0xff]   ;;  %v1126_v58 = vld [vmem:[#allocation5 + $0x110] sm:$0xff]  }
  0x2f   :  { %961 = vmatpush3.bf16.msra.mxu0 %v1100_v17  ;;  %v61_v57 = vld [vmem:[#allocation2 + $0x28] sm:$0xff]  ;;  %v1127_v59 = vld [vmem:[#allocation5 + $0x148] sm:$0xff]   ;;  %v68_v60 = vld [vmem:[#allocation2 + $0x60] sm:$0xff] }
  0x30   :  { %962 = vmatprep.subr.bf16.mxu0 %v1103_v20  ;;  %v75_v61 = vpack.c.bf16 %v68_v60, %v61_v57  ;;  %v62_v62 = vld [vmem:[#allocation2 + $0x30] sm:$0xff]  ;;  %v69_v63 = vld [vmem:[#allocation2 + $0x68] sm:$0xff]  ;;  %v1128_v1 = vld [vmem:[#allocation5 + $0x108] sm:$0xff]  }
  0x31   :  { %983 = vmatpush3.bf16.msra.mxu1 %v1102_v19  ;;  %v76_v0 = vpack.c.bf16 %v69_v63, %v62_v62  ;;  %v1129_v2 = vld [vmem:[#allocation5 + $0x140] sm:$0xff]   ;;  %v60_v4 = vld [vmem:[#allocation2 + $0x20] sm:$0xff]  ;;  %v67_v5 = vld [vmem:[#allocation2 + $0x58] sm:$0xff] }
  0x32   :  { %984 = vmatprep.subr.bf16.mxu1 %v1105_v22  ;;  %v1130_v3 = vld [vmem:[#allocation5 + $0x100] sm:$0xff]   ;;  %v74_v6 = vpack.c.bf16 %v67_v5, %v60_v4  ;;  %v1132_v7 = vld [vmem:[%s1345_s3 + $0x38] sm:$0xff]   ;;  %v1134_v9 = vld [vmem:[%s1345_s3 + $0x28] sm:$0xff]  }
  0x33   :  { %963 = vmatpush3.bf16.msra.mxu0 %v1104_v21  ;;  %v1133_v8 = vld [vmem:[%s1345_s3 + $0x30] sm:$0xff]   ;;  %v1135_v10 = vld [vmem:[%s1345_s3 + $0x20] sm:$0xff]   ;;  %v1136_v11 = vld [vmem:[%s1345_s3 + $0x18] sm:$0xff]  }
  0x34   :  { %964 = vmatprep.subr.bf16.mxu0 %v1107_v24  ;;  %v1137_v12 = vld [vmem:[%s1345_s3 + $0x10] sm:$0xff]   ;;  %v1138_v13 = vld [vmem:[%s1345_s3 + $0x8] sm:$0xff]   ;;  %v1139_v14 = vld [vmem:[%s1345_s3] sm:$0xff]  }
  0x35   :  { %985 = vmatpush3.bf16.msra.mxu1 %v1106_v23  ;;  %v1140_v15 = vld [vmem:[%s1347_s5 + $0x18] sm:$0xff]  }
  0x36   :  { %986 = vmatprep.subr.bf16.mxu1 %v1109_v26 }
  0x37   :  { %965 = vmatpush3.bf16.msra.mxu0 %v1108_v25 }
  0x38   :  { %966 = vmatprep.subr.bf16.mxu0 %v1111_v28  ;;  %v886_v28 = vld [vmem:[%s1344_s2] ss:$0 sm:$0xff] }
  0x39   :  { %987 = vmatpush3.bf16.msra.mxu1 %v1110_v27 }
  0x3a   :  { %988 = vmatprep.subr.bf16.mxu1 %v1113_v30 }
  0x3b   :  { %967 = vmatpush3.bf16.msra.mxu0 %v1112_v29 }
  0x3c   :  { %996 = vmatprep.subr.bf16.mxu0 %v1115_v38 }
  0x3d   :  { %989 = vmatpush3.bf16.msra.mxu1 %v1114_v34 }
  0x3e   :  { %1034 = vmatprep.subr.bf16.mxu1 %v1224_v43  ;;  %513 = vmatmul.mubr.bf16.vlgmr.msra.gmra.mxu0 %v70_v37 }
  0x3f   :  { %997 = vmatpush3.bf16.msra.mxu0 %v1116_v42  ;;  %594 = vmatprep.mubr.bf16.mxu0 %v75_v61 }
  0x40   :  { %554 = vmatmul.mubr.bf16.vlgmr.msra.gmra.mxu1 %v72_v46  ;;  %998 = vmatprep.subr.bf16.mxu0 %v1117_v47 }
  0x41   :  { %1036 = vmatprep.mubr.msk.bf16.mxu1 %vm1225_vm0, %v1224_v43  ;;  %1035 = vmatpush3.bf16.msra.mxu1 %v1131_v56 }
  0x42   :  { %1040 = vmatprep.subr.bf16.mxu1 %v1224_v43 }
  0x43   :  { %999 = vmatpush3.bf16.msra.mxu0 %v1118_v48 }
  0x44   :  { %1000 = vmatprep.subr.bf16.mxu0 %v1119_v49 }
  0x47   :  { %1001 = vmatpush3.bf16.msra.mxu0 %v1120_v50 }
  0x48   :  { %1002 = vmatprep.subr.bf16.mxu0 %v1121_v51  ;;  %1037 = vmatmul.mubr.msk.bf16.vlgmr.msra.gmra.mxu1 %vm476_vm1, %v76_v0  ;;  %v1141_v51 = vld [vmem:[%s1347_s5 + $0x10] sm:$0xff]  }
  0x49   :  { %1056 = vmatprep.mubr.msk.bf16.mxu1 %vm1225_vm0, %v1224_v43  ;;  %1041 = vmatpush3.bf16.msra.mxu1 %v1132_v7 }
  0x4a   :  { %1042 = vmatprep.subr.bf16.mxu1 %v1224_v43 }
  0x4b   :  { %1003 = vmatpush3.bf16.msra.mxu0 %v1122_v52  ;;  %v1142_v52 = vld [vmem:[%s1347_s5 + $0x8] sm:$0xff]  }
  0x4c   :  { %1004 = vmatprep.subr.bf16.mxu0 %v1123_v53  ;;  %v1143_v53 = vld [vmem:[%s1347_s5] sm:$0xff]  }
  0x4d   :  { %1043 = vmatpush3.bf16.msra.mxu1 %v1133_v8 }
  0x4e   :  { %1044 = vmatprep.subr.bf16.mxu1 %v1224_v43 }
  0x4f   :  { %1005 = vmatpush3.bf16.msra.mxu0 %v1124_v54  ;;  %v937_v54 = vld [vmem:[%s1346_s4] ss:$0 sm:$0xff]  ;;  %s1226_s4 = smov [#allocation7]  }
  0x50   :  { %1006 = vmatprep.subr.bf16.mxu0 %v1125_v55  ;;  %s873_s5 = sshll.u32 %s1226_s4, 4  ;;  %s874_s5 = int_to_ptr.vmem [resolvable:$true] %s873_s5 }
  0x51   :  { %1045 = vmatpush3.bf16.msra.mxu1 %v1134_v9  ;;  %p1197_p11 = scmp.lt.s32.totalorder %s874_s5, %s874_s5 }
  0x52   :  { %1046 = vmatprep.subr.bf16.mxu1 %v1224_v43 }
  0x53   :  { %1007 = vmatpush3.bf16.msra.mxu0 %v1126_v58 }
  0x54   :  { %1008 = vmatprep.subr.bf16.mxu0 %v1127_v59 }
  0x55   :  { %1047 = vmatpush3.bf16.msra.mxu1 %v1135_v10 }
  0x56   :  { %1048 = vmatprep.subr.bf16.mxu1 %v1224_v43 }
  0x57   :  { %1009 = vmatpush3.bf16.msra.mxu0 %v1128_v1 }
  0x58   :  { %1010 = vmatprep.subr.bf16.mxu0 %v1129_v2 }
  0x59   :  { %1049 = vmatpush3.bf16.msra.mxu1 %v1136_v11 }
  0x5a   :  { %1050 = vmatprep.subr.bf16.mxu1 %v1224_v43 }
  0x5b   :  { %1011 = vmatpush3.bf16.msra.mxu0 %v1130_v3 }
  0x5c   :  { %1060 = vmatprep.subr.bf16.mxu0 %v1224_v43 }
  0x5d   :  { %1051 = vmatpush3.bf16.msra.mxu1 %v1137_v12 }
  0x5e   :  { %595 = vmatmul.mubr.bf16.vlgmr.msra.gmra.mxu0 %v74_v6  ;;  %1052 = vmatprep.subr.bf16.mxu1 %v1224_v43 }
  0x5f   :  { %1068 = vmatprep.mubr.msk.bf16.mxu0 %vm1225_vm0, %v1224_v43  ;;  %1061 = vmatpush3.bf16.msra.mxu0 %v1140_v15 }
  0x60   :  { %1062 = vmatprep.subr.bf16.mxu0 %v1224_v43 }
  0x61   :  { %1053 = vmatpush3.bf16.msra.mxu1 %v1138_v13 }
  0x62   :  { %1054 = vmatprep.subr.bf16.mxu1 %v1224_v43 }
  0x63   :  { %1063 = vmatpush3.bf16.msra.mxu0 %v1141_v51 }
  0x64   :  { %1064 = vmatprep.subr.bf16.mxu0 %v1224_v43 }
  0x65   :  { %1055 = vmatpush3.bf16.msra.mxu1 %v1139_v14 }
  0x67   :  { %1065 = vmatpush3.bf16.msra.mxu0 %v1142_v52 }
  0x68   :  { %1066 = vmatprep.subr.bf16.mxu0 %v1224_v43  ;;  %v946_v43 = vld [vmem:[%s1348_s6] ss:$0 sm:$0xff]  ;;  %s1192_s6 = scalar_lea.vmem %s874_s5, 256 }
  0x69   :  { %p1193_p10 = scmp.ne.s32.totalorder %s874_s5, %s1192_s6  ;;  %p1198_p12 = scmp.lt.s32.totalorder %s1192_s6, %s1192_s6 }
  0x6b   :  { %1067 = vmatpush3.bf16.msra.mxu0 %v1143_v53  ;;  %p1199_p13 = por %p1198_p12, %p1197_p11 }
  0x6d   :  { %p1200_p0 = pnand %p1199_p13, %p1193_p10 }
  0xfe   :  { %v968_v19 = vpop.f32.mrf.mxu0 }
 0x100   :  { %v990_v16 = vpop.f32.mrf.mxu1  ;;  %v969_v21 = vpop.f32.mrf.mxu0 }
 0x101   :  { %v970_v27 = vadd.f32 %v969_v21, %v968_v19 }
 0x102   :  { %v991_v17 = vpop.f32.mrf.mxu1  ;;  %v971_v24 = vpop.f32.mrf.mxu0 }
 0x103   :  { %v515_v30 = vadd.f32 %v970_v27, %v886_v28  ;;  %v992_v31 = vadd.f32 %v991_v17, %v990_v16 }
 0x104   :  { %v993_v18 = vpop.f32.mrf.mxu1  ;;  %v972_v29 = vpop.f32.mrf.mxu0 }
 0x105   :  { %v973_v32 = vadd.f32 %v972_v29, %v971_v24  ;;  %v556_v35 = vadd.f32 %v992_v31, %v515_v30 }
 0x106   :  { %v994_v20 = vpop.f32.mrf.mxu1 }
 0x107   :  { %v518_v36 = vadd.f32 %v973_v32, %v886_v28  ;;  %v995_v37 = vadd.f32 %v994_v20, %v993_v18 }
 0x108   :  { %v637_v22 = vpop.f32.mrf.mxu1 }
 0x109   :  { %v559_v42 = vadd.f32 %v995_v37, %v518_v36 }
 0x10a   :  { %v1038_v23 = vpop.f32.mrf.mxu1 }
 0x10c   :  { %v640_v25 = vpop.f32.mrf.mxu1 }
 0x10e   :  { %v1039_v26 = vpop.f32.mrf.mxu1 }
 0x11e   :  { %v1012_v33 = vpop.f32.mrf.mxu0 }
 0x120   :  { %v1013_v34 = vpop.f32.mrf.mxu0 }
 0x121   :  { %v1014_v38 = vadd.f32 %v1013_v34, %v1012_v33 }
 0x122   :  { %v1015_v39 = vpop.f32.mrf.mxu0 }
 0x123   :  { %v597_v40 = vadd.f32 %v1014_v38, %v556_v35 }
 0x124   :  { %v1016_v41 = vpop.f32.mrf.mxu0 }
 0x125   :  { %v1017_v44 = vadd.f32 %v1016_v41, %v1015_v39  ;;  %v638_v45 = vadd.f32 %v637_v22, %v597_v40 }
 0x127   :  { %v600_v46 = vadd.f32 %v1017_v44, %v559_v42  ;;  %v644_v48 = vmax.f32 %v638_v45, 0.0 }
 0x129   :  { %v641_v47 = vadd.f32 %v640_v25, %v600_v46 }
 0x12b   :  { %v645_v49 = vmax.f32 %v641_v47, 0.0 }
 0x12d   :  { %v646_v50 = vpack.c.bf16 %v645_v49, %v644_v48 }
 0x12f   :  { %1057 = vmatmul.mubr.bf16.vlgmr.msra.gmra.mxu1 %v646_v50 }
 0x1ef   :  { %v752_v55 = vpop.f32.mrf.mxu1 }
 0x1f0   :  { %v753_v57 = vadd.f32 %v937_v54, %v752_v55 }
 0x1f1   :  { %v1058_v56 = vpop.f32.mrf.mxu1 }
 0x1f2   :  { %v759_v61 = vmax.f32 %v753_v57, 0.0 }
 0x1f3   :  { %v755_v58 = vpop.f32.mrf.mxu1 }
 0x1f4   :  { %v756_v59 = vadd.f32 %v937_v54, %v755_v58 }
 0x1f5   :  { %v1059_v60 = vpop.f32.mrf.mxu1 }
 0x1f6   :  { %v760_v62 = vmax.f32 %v756_v59, 0.0 }
 0x1f8   :  { %v761_v63 = vpack.c.bf16 %v760_v62, %v759_v61 }
 0x1fa   :  { %1069 = vmatmul.mubr.msk.bf16.vlgmr.msra.gmra.mxu0 %vm801_vm2, %v761_v63 }
 0x2ba   :  { %v839_v0 = vpop.f32.mrf.mxu0 }
 0x2bb   :  { %v840_v1 = vadd.f32 %v946_v43, %v839_v0 }
 0x2bc   :  { %v1070_v2 = vpop.f32.mrf.mxu0 }
 0x2bd   :  { %846 = vmax.xlane.f32.xlu0 %v840_v1 }
 0x2be   :  { %v842_v3 = vpop.f32.mrf.mxu0 }
 0x2bf   :  { %v843_v4 = vadd.f32 %v946_v43, %v842_v3 }
 0x2c0   :  { %v1071_v5 = vpop.f32.mrf.mxu0 }
 0x2c1   :  { %848 = vmax.xlane.f32.xlu0 %v843_v4 }
 0x346   :  { %v847_v6 = vpop.xlane.xlu0 %846 }
 0x347   :  { %v850_v7 = vsub.f32 %v840_v1, %v847_v6 }
 0x349   :  { %v852_v8 = vmul.f32 1.442695, %v850_v7 }
 0x34a   :  { %v849_v9 = vpop.xlane.xlu0 %848 }
 0x34b   :  { %v851_v10 = vsub.f32 %v843_v4, %v849_v9  ;;  %1144 = vpow2.f32 %v852_v8 }
 0x34d   :  { %v854_v11 = vmul.f32 1.442695, %v851_v10 }
 0x34f   :  { %1146 = vpow2.f32 %v854_v11 }
 0x358   :  { %v1145_v12 = vpop.eup %1144 }
 0x359   :  { %856 = vadd.xlane.f32.xlu1 %v1145_v12 }
 0x35c   :  { %v1147_v13 = vpop.eup %1146 }
 0x35d   :  { %858 = vadd.xlane.f32.xlu1 %v1147_v13 }
 0x3e2   :  { %v857_v14 = vpop.xlane.xlu1 %856 }
 0x3e3   :  { %1148 = vlog2.f32 %v857_v14 }
 0x3e6   :  { %v859_v15 = vpop.xlane.xlu1 %858 }
 0x3e7   :  { %1150 = vlog2.f32 %v859_v15 }
 0x3f0   :  { %v1149_v16 = vpop.eup %1148 }
 0x3f1   :  { %v861_v17 = vmul.f32 0.6931472, %v1149_v16 }
 0x3f3   :  { %v864_v18 = vsub.f32 %v850_v7, %v861_v17 }
 0x3f4   :  { %v1151_v19 = vpop.eup %1150 }
 0x3f5   :  { %866 = vst [vmem:[#allocation7] sm:$0xff] %v864_v18  ;;  %v863_v20 = vmul.f32 0.6931472, %v1151_v19 }
 0x3f7   :  { %v865_v21 = vsub.f32 %v851_v10, %v863_v20 }
 0x3f9   :  { %867 = vst [vmem:[#allocation7 + $0x8] sm:$0xff] %v865_v21 }
 0x3fa   :  { %1203 = shalt.err (!%p1200_p0)
}
 0x3fb   :  { %s1227_s16 = smov 128   ;;  %s1228_s17 = smov 8  }
 0x3fc   :  { %879 = dma.vmem_to_hbm [thread:$0]  %s874_s5, 256, %s1349_s7, [#allocation4], %s1227_s16, %s1227_s16, %s1228_s17  }
 0x3fd   :  { %1216 = dma.done.wait [#allocation4], 256  }
 0x3fe   :  { %1217 = vsyncadd [#allocation4], 4294967040 }
 0x3ff   :  { %883 = vsyncpa [#allocation3], 1 }
 0x400   :  { %884 = vsyncpa [#allocation6], 1 }
 0x401   :  { %885 = vsyncpa [#allocation4], 1 }

</bundles_post_ra>
